<compile_context>
chip_gen: v6e
topology: v6e:2x2x1
jax: 0.10.0
libtpu: 0.0.40
codegen_flags: <defaults>
</compile_context>

<pallas_src>
import jax
import jax.numpy as jnp
from jax.experimental import pallas as pl
from jax.experimental.pallas import tpu as pltpu


def _round_up(x, m):
    return ((x + m - 1) // m) * m


# --------------------------------------------------------------------------- #
# Kernel
# --------------------------------------------------------------------------- #
def _ae_classifier_kernel(
    x_ref,              # [TB, Dp]        bf16 (streamed per grid step)
    w1_ref, b1_ref,     # [Dp, Hp] bf16,  [1, Hp] f32   (BN1 folded in)
    w2_ref, b2_ref,     # [Hp, Zp] bf16,  [1, Zp] f32   (BN2 folded in)
    w3c_ref, b3c_ref,   # [Zp, Hp+Cp] bf16, [1, Hp+Cp] f32 (decoder L1 ++ classifier)
    w4_ref, b4_ref,     # [Hp, Dp] bf16,  [1, Dp] f32
    out_ref,            # out: [TB, Dp+Cp] bf16 (recon lanes then logit lanes)
):
    hp = w4_ref.shape[0]  # 128-aligned split between decoder-hidden and logit lanes

    x = x_ref[...]        # already bf16

    # ----- encoder (BatchNorm folded into W/b; Dropout = identity in eval) -----
    h1 = jnp.dot(x, w1_ref[...], preferred_element_type=jnp.float32) + b1_ref[...]
    h1 = jnp.maximum(h1, 0.0)

    z = jnp.dot(h1.astype(jnp.bfloat16), w2_ref[...],
                preferred_element_type=jnp.float32) + b2_ref[...]
    z = jnp.maximum(z, 0.0)

    # ----- fused decoder-layer-1 + classifier (both consume z) -----
    dc = jnp.dot(z.astype(jnp.bfloat16), w3c_ref[...],
                 preferred_element_type=jnp.float32) + b3c_ref[...]
    d1 = jnp.maximum(dc[:, :hp], 0.0)

    # ----- decoder output layer -----
    recon = jnp.dot(d1.astype(jnp.bfloat16), w4_ref[...],
                    preferred_element_type=jnp.float32) + b4_ref[...]

    # single lane-dense output slab: [recon | logits]
    out_ref[...] = jnp.concatenate([recon, dc[:, hp:]], axis=1).astype(out_ref.dtype)


# --------------------------------------------------------------------------- #
# One-time parameter preparation (hoisted out of the per-call path)
# --------------------------------------------------------------------------- #
def prepare_params(params, eps=1e-5):
    """Fold eval-mode BatchNorm, pad to 128 lanes, cast weights to bf16. Run once."""
    D_in, H = params["w1"].shape
    Z = params["w2"].shape[1]
    C = params["wc"].shape[1]

    s1 = params["bn1_gamma"] / jnp.sqrt(params["bn1_var"] + eps)
    t1 = params["bn1_beta"] - params["bn1_mean"] * s1
    s2 = params["bn2_gamma"] / jnp.sqrt(params["bn2_var"] + eps)
    t2 = params["bn2_beta"] - params["bn2_mean"] * s2

    w1f = params["w1"] * s1[None, :]
    b1f = params["b1"] * s1 + t1
    w2f = params["w2"] * s2[None, :]
    b2f = params["b2"] * s2 + t2

    Dp, Hp, Zp, Cp = (_round_up(d, 128) for d in (D_in, H, Z, C))

    def pad2(a, r, c):
        return jnp.pad(a, ((0, r - a.shape[0]), (0, c - a.shape[1])))

    def pad_row(v, c):
        return jnp.pad(v, (0, c - v.shape[0])).reshape(1, c).astype(jnp.float32)

    bf16 = jnp.bfloat16
    w1p = pad2(w1f, Dp, Hp).astype(bf16)
    w2p = pad2(w2f, Hp, Zp).astype(bf16)
    w3c = jnp.concatenate(
        [pad2(params["w3"], Zp, Hp), pad2(params["wc"], Zp, Cp)], axis=1
    ).astype(bf16)                                                  # [Zp, Hp+Cp]
    w4p = pad2(params["w4"], Hp, Dp).astype(bf16)

    b1p = pad_row(b1f, Hp)
    b2p = pad_row(b2f, Zp)
    b3c = jnp.concatenate([pad_row(params["b3"], Hp), pad_row(params["bc"], Cp)], axis=1)
    b4p = pad_row(params["b4"], Dp)

    mxu_terms = Dp * Hp + Hp * Zp + Zp * (Hp + Cp) + Hp * Dp
    weight_bytes = 2 * mxu_terms + 4 * (Hp + Zp + (Hp + Cp) + Dp)

    prepared = dict(w1=w1p, b1=b1p, w2=w2p, b2=b2p, w3c=w3c, b3c=b3c, w4=w4p, b4=b4p)
    jax.block_until_ready(prepared)   # materialize once, not per forward call
    prepared["dims"] = (int(D_in), int(H), int(Z), int(C), Dp, Hp, Zp, Cp)
    prepared["mxu_terms"] = mxu_terms
    prepared["weight_bytes"] = weight_bytes
    return prepared


# --------------------------------------------------------------------------- #
# VMEM budgeting / tile selection (generation-aware)
# --------------------------------------------------------------------------- #
def _vmem_cap_bytes():
    # ~80% of per-core physical VMEM: ~100 MiB on v5e/v6e (128 MiB), ~51 MiB on v7x (64 MiB)
    try:
        phys = int(pltpu.get_tpu_info().vmem_capacity_bytes)
    except Exception:
        phys = 64 << 20   # conservative default (v7x per-core)
    return int(phys * 0.8)


def _vmem_budget_bytes(tile_b, Dp, Hp, Zp, Cp, weight_bytes):
    # bf16 input tile + bf16 output slab, double-buffered by the pipeline
    io = 4 * tile_b * (2 * Dp + Cp)
    # f32 intermediates (h1, z, dc, d1, recon) + their bf16 casts ~ 6 B/elem
    inter = 6 * tile_b * (Hp + Zp + (Hp + Cp) + Hp + Dp)
    return weight_bytes + io + inter


def _pick_tile_b(B, Dp, Hp, Zp, Cp, weight_bytes, vmem_cap):
    if B <= 256:
        return max(16, _round_up(B, 16))          # >= bf16 sublane tile
    target = min(2048, _round_up(B, 256))
    if B >= 1024:
        # keep >= 2 grid steps so the "parallel" batch axis can shard across
        # both TensorCores on v7x
        target = min(target, _round_up(-(-B // 2), 256))
    tb = target
    headroom = 8 << 20
    while tb > 256 and _vmem_budget_bytes(tb, Dp, Hp, Zp, Cp, weight_bytes) + headroom > vmem_cap:
        tb = _round_up(tb // 2, 256)
    return tb


# --------------------------------------------------------------------------- #
# Forward wrapper
# --------------------------------------------------------------------------- #
def autoencoder_classifier_forward(x, prepared, *, tile_b=None):
    """x: [B, input_dim] float32. prepared: output of prepare_params()."""
    B, D_in = x.shape
    D_in_p, H, Z, C, Dp, Hp, Zp, Cp = prepared["dims"]
    assert D_in == D_in_p, "input feature dim mismatch with prepared params"

    weight_bytes = prepared["weight_bytes"]
    vmem_cap = _vmem_cap_bytes()
    if tile_b is None:
        tile_b = _pick_tile_b(B, Dp, Hp, Zp, Cp, weight_bytes, vmem_cap)
    Bp = _round_up(B, tile_b)

    # stream activations as bf16 (kernel is HBM-bandwidth bound at these sizes)
    xp = jnp.pad(x, ((0, Bp - B), (0, Dp - D_in))).astype(jnp.bfloat16)

    grid = (Bp // tile_b,)

    x_spec = pl.BlockSpec((tile_b, Dp), lambda i: (i, 0))
    out_spec = pl.BlockSpec((tile_b, Dp + Cp), lambda i: (i, 0))
    out_shape = jax.ShapeDtypeStruct((Bp, Dp + Cp), jnp.bfloat16)

    # Advisory cost estimate so XLA schedules around this custom call sensibly.
    mxu_terms = prepared["mxu_terms"]
    cost = pl.CostEstimate(
        flops=2 * Bp * mxu_terms,
        transcendentals=0,
        bytes_accessed=2 * Bp * (2 * Dp + Cp) + weight_bytes,
    )

    budget = _vmem_budget_bytes(tile_b, Dp, Hp, Zp, Cp, weight_bytes)
    vmem_limit = int(max(16 << 20, min(budget + (8 << 20), vmem_cap)))

    operands = (xp,
                prepared["w1"], prepared["b1"],
                prepared["w2"], prepared["b2"],
                prepared["w3c"], prepared["b3c"],
                prepared["w4"], prepared["b4"])

    def _run(single_buffer_weights):
        def wspec(shape):
            if single_buffer_weights:
                # constant index_map -> never re-fetched -> one resident copy
                return pl.BlockSpec(shape, lambda i: (0, 0), pipeline_mode=pl.Buffered(1))
            return pl.BlockSpec(shape, lambda i: (0, 0))

        in_specs = [
            x_spec,
            wspec((Dp, Hp)), wspec((1, Hp)),
            wspec((Hp, Zp)), wspec((1, Zp)),
            wspec((Zp, Hp + Cp)), wspec((1, Hp + Cp)),
            wspec((Hp, Dp)), wspec((1, Dp)),
        ]
        return pl.pallas_call(
            _ae_classifier_kernel,
            grid=grid,
            in_specs=in_specs,
            out_specs=out_spec,
            out_shape=out_shape,
            compiler_params=pltpu.CompilerParams(
                dimension_semantics=("parallel",),   # batch tiles are independent
                vmem_limit_bytes=vmem_limit,
            ),
            cost_estimate=cost,
        )(*operands)

    try:
        out_p = _run(True)
    except Exception:
        # Fallback if single-buffered resident weights (pl.Buffered(1)) are not
        # supported by this jax build: default double-buffered specs.
        out_p = _run(False)

    recon = out_p[:B, :D_in].astype(jnp.float32)
    logits = out_p[:B, Dp:Dp + C].astype(jnp.float32)
    return recon, logits


# --------------------------------------------------------------------------- #
# Pure-JAX reference + synthetic params
# --------------------------------------------------------------------------- #
def reference_forward(x, params):
    """Pure-JAX f32 reference (eval-mode module semantics) for validation."""
    eps = 1e-5
    s1 = params["bn1_gamma"] / jnp.sqrt(params["bn1_var"] + eps)
    t1 = params["bn1_beta"] - params["bn1_mean"] * s1
    s2 = params["bn2_gamma"] / jnp.sqrt(params["bn2_var"] + eps)
    t2 = params["bn2_beta"] - params["bn2_mean"] * s2
    h1 = jnp.maximum((x @ params["w1"] + params["b1"]) * s1 + t1, 0.0)
    z = jnp.maximum((h1 @ params["w2"] + params["b2"]) * s2 + t2, 0.0)
    d1 = jnp.maximum(z @ params["w3"] + params["b3"], 0.0)
    recon = d1 @ params["w4"] + params["b4"]
    logits = z @ params["wc"] + params["bc"]
    return recon, logits


def init_params(key, input_dim, hidden_dim, bottleneck_dim, num_classes):
    """Deterministic synthetic parameters. Linear weights stored as [in, out]."""
    ks = jax.random.split(key, 12)

    def lin(k, fan_in, fan_out):
        kw, kb = jax.random.split(k)
        bound = 1.0 / jnp.sqrt(fan_in)
        w = jax.random.uniform(kw, (fan_in, fan_out), jnp.float32, -bound, bound)
        b = jax.random.uniform(kb, (fan_out,), jnp.float32, -bound, bound)
        return w, b

    w1, b1 = lin(ks[0], input_dim, hidden_dim)
    w2, b2 = lin(ks[1], hidden_dim, bottleneck_dim)
    w3, b3 = lin(ks[2], bottleneck_dim, hidden_dim)
    w4, b4 = lin(ks[3], hidden_dim, input_dim)
    wc, bc = lin(ks[4], bottleneck_dim, num_classes)

    return dict(
        w1=w1, b1=b1, w2=w2, b2=b2, w3=w3, b3=b3, w4=w4, b4=b4, wc=wc, bc=bc,
        bn1_gamma=1.0 + 0.1 * jax.random.normal(ks[5], (hidden_dim,), jnp.float32),
        bn1_beta=0.1 * jax.random.normal(ks[6], (hidden_dim,), jnp.float32),
        bn1_mean=0.05 * jax.random.normal(ks[7], (hidden_dim,), jnp.float32),
        bn1_var=jnp.abs(1.0 + 0.1 * jax.random.normal(ks[8], (hidden_dim,), jnp.float32)),
        bn2_gamma=1.0 + 0.1 * jax.random.normal(ks[9], (bottleneck_dim,), jnp.float32),
        bn2_beta=0.1 * jax.random.normal(ks[10], (bottleneck_dim,), jnp.float32),
        bn2_mean=0.05 * jax.random.normal(ks[11], (bottleneck_dim,), jnp.float32),
        bn2_var=jnp.ones((bottleneck_dim,), jnp.float32),
    )


if __name__ == "__main__":
    key = jax.random.PRNGKey(0)
    kx, kp = jax.random.split(key)

    # Small shapes consistent with the module's forward (x: [batch, input_dim]).
    batch, input_dim, hidden_dim, bottleneck_dim, num_classes = 8, 32, 64, 32, 2

    x = jax.random.normal(kx, (batch, input_dim), jnp.float32)
    params = init_params(kp, input_dim, hidden_dim, bottleneck_dim, num_classes)

    prepared = prepare_params(params)   # one-time weight preprocessing

    recon, logits = autoencoder_classifier_forward(x, prepared)
    jax.block_until_ready((recon, logits))

    assert recon.shape == (batch, input_dim)
    assert logits.shape == (batch, num_classes)
    assert bool(jnp.isfinite(recon).all()) and bool(jnp.isfinite(logits).all())

    # Sanity check against the pure-JAX f32 reference (bf16 weights/streams -> loose tol).
    recon_ref, logits_ref = reference_forward(x, params)
    assert float(jnp.max(jnp.abs(recon - recon_ref))) < 0.1
    assert float(jnp.max(jnp.abs(logits - logits_ref))) < 0.1

    print("KERNEL_OK")
</pallas_src>

<mosaic_0001>
module attributes {stable_mosaic.version = 11 : i64} {
  func.func @_ae_classifier_kernel(%arg0: i32, %arg1: memref<16x128xbf16, #tpu.memory_space<vmem>>, %arg2: memref<128x128xbf16, #tpu.memory_space<vmem>>, %arg3: memref<1x128xf32, #tpu.memory_space<vmem>>, %arg4: memref<128x128xbf16, #tpu.memory_space<vmem>>, %arg5: memref<1x128xf32, #tpu.memory_space<vmem>>, %arg6: memref<128x256xbf16, #tpu.memory_space<vmem>>, %arg7: memref<1x256xf32, #tpu.memory_space<vmem>>, %arg8: memref<128x128xbf16, #tpu.memory_space<vmem>>, %arg9: memref<1x128xf32, #tpu.memory_space<vmem>>, %arg10: memref<16x256xbf16, #tpu.memory_space<vmem>>) attributes {dimension_semantics = [#tpu.dimension_semantics<parallel>], iteration_bounds = array<i64: 1>, scalar_prefetch = 0 : i64, scratch_operands = 0 : i64, tpu.core_type = #tpu.core_type<tc>, window_params = [{transform_indices = @transform_0, window_bounds = array<i64: 16, 128>}, {pipeline_mode = #tpu.pipeline_mode<synchronous>, transform_indices = @transform_1, window_bounds = array<i64: 128, 128>}, {pipeline_mode = #tpu.pipeline_mode<synchronous>, transform_indices = @transform_2, window_bounds = array<i64: 1, 128>}, {pipeline_mode = #tpu.pipeline_mode<synchronous>, transform_indices = @transform_3, window_bounds = array<i64: 128, 128>}, {pipeline_mode = #tpu.pipeline_mode<synchronous>, transform_indices = @transform_4, window_bounds = array<i64: 1, 128>}, {pipeline_mode = #tpu.pipeline_mode<synchronous>, transform_indices = @transform_5, window_bounds = array<i64: 128, 256>}, {pipeline_mode = #tpu.pipeline_mode<synchronous>, transform_indices = @transform_6, window_bounds = array<i64: 1, 256>}, {pipeline_mode = #tpu.pipeline_mode<synchronous>, transform_indices = @transform_7, window_bounds = array<i64: 128, 128>}, {pipeline_mode = #tpu.pipeline_mode<synchronous>, transform_indices = @transform_8, window_bounds = array<i64: 1, 128>}, {transform_indices = @transform_9, window_bounds = array<i64: 16, 256>}]} {
    %c0 = arith.constant 0 : index
    %c0_0 = arith.constant 0 : index
    %0 = vector.load %arg1[%c0, %c0_0] : memref<16x128xbf16, #tpu.memory_space<vmem>>, vector<16x128xbf16>
    %c0_1 = arith.constant 0 : index
    %c0_2 = arith.constant 0 : index
    %1 = vector.load %arg2[%c0_1, %c0_2] : memref<128x128xbf16, #tpu.memory_space<vmem>>, vector<128x128xbf16>
    %cst = arith.constant dense<0.000000e+00> : vector<16x128xf32>
    %2 = tpu.matmul %0, %1, %cst {dimension_numbers = #tpu.dot_dimension_numbers<[1], [0], [0], [1], [0, 0, 1, 1], [], []>} : vector<16x128xbf16>, vector<128x128xbf16>, vector<16x128xf32> -> vector<16x128xf32>
    %c0_3 = arith.constant 0 : index
    %c0_4 = arith.constant 0 : index
    %3 = vector.load %arg3[%c0_3, %c0_4] : memref<1x128xf32, #tpu.memory_space<vmem>>, vector<1x128xf32>
    %4 = vector.broadcast %3 : vector<1x128xf32> to vector<16x128xf32>
    %5 = arith.addf %2, %4 : vector<16x128xf32>
    %cst_5 = arith.constant 0.000000e+00 : f32
    %6 = vector.broadcast %cst_5 : f32 to vector<16x128xf32>
    %7 = arith.maximumf %5, %6 : vector<16x128xf32>
    %8 = arith.truncf %7 : vector<16x128xf32> to vector<16x128xbf16>
    %c0_6 = arith.constant 0 : index
    %c0_7 = arith.constant 0 : index
    %9 = vector.load %arg4[%c0_6, %c0_7] : memref<128x128xbf16, #tpu.memory_space<vmem>>, vector<128x128xbf16>
    %cst_8 = arith.constant dense<0.000000e+00> : vector<16x128xf32>
    %10 = tpu.matmul %8, %9, %cst_8 {dimension_numbers = #tpu.dot_dimension_numbers<[1], [0], [0], [1], [0, 0, 1, 1], [], []>} : vector<16x128xbf16>, vector<128x128xbf16>, vector<16x128xf32> -> vector<16x128xf32>
    %c0_9 = arith.constant 0 : index
    %c0_10 = arith.constant 0 : index
    %11 = vector.load %arg5[%c0_9, %c0_10] : memref<1x128xf32, #tpu.memory_space<vmem>>, vector<1x128xf32>
    %12 = vector.broadcast %11 : vector<1x128xf32> to vector<16x128xf32>
    %13 = arith.addf %10, %12 : vector<16x128xf32>
    %cst_11 = arith.constant 0.000000e+00 : f32
    %14 = vector.broadcast %cst_11 : f32 to vector<16x128xf32>
    %15 = arith.maximumf %13, %14 : vector<16x128xf32>
    %16 = arith.truncf %15 : vector<16x128xf32> to vector<16x128xbf16>
    %c0_12 = arith.constant 0 : index
    %c0_13 = arith.constant 0 : index
    %17 = vector.load %arg6[%c0_12, %c0_13] : memref<128x256xbf16, #tpu.memory_space<vmem>>, vector<128x256xbf16>
    %cst_14 = arith.constant dense<0.000000e+00> : vector<16x256xf32>
    %18 = tpu.matmul %16, %17, %cst_14 {dimension_numbers = #tpu.dot_dimension_numbers<[1], [0], [0], [1], [0, 0, 1, 1], [], []>} : vector<16x128xbf16>, vector<128x256xbf16>, vector<16x256xf32> -> vector<16x256xf32>
    %c0_15 = arith.constant 0 : index
    %c0_16 = arith.constant 0 : index
    %19 = vector.load %arg7[%c0_15, %c0_16] : memref<1x256xf32, #tpu.memory_space<vmem>>, vector<1x256xf32>
    %20 = vector.broadcast %19 : vector<1x256xf32> to vector<16x256xf32>
    %21 = arith.addf %18, %20 : vector<16x256xf32>
    %22 = vector.extract_strided_slice %21 {offsets = [0, 0], sizes = [16, 128], strides = [1, 1]} : vector<16x256xf32> to vector<16x128xf32>
    %cst_17 = arith.constant 0.000000e+00 : f32
    %23 = vector.broadcast %cst_17 : f32 to vector<16x128xf32>
    %24 = arith.maximumf %22, %23 : vector<16x128xf32>
    %25 = arith.truncf %24 : vector<16x128xf32> to vector<16x128xbf16>
    %c0_18 = arith.constant 0 : index
    %c0_19 = arith.constant 0 : index
    %26 = vector.load %arg8[%c0_18, %c0_19] : memref<128x128xbf16, #tpu.memory_space<vmem>>, vector<128x128xbf16>
    %cst_20 = arith.constant dense<0.000000e+00> : vector<16x128xf32>
    %27 = tpu.matmul %25, %26, %cst_20 {dimension_numbers = #tpu.dot_dimension_numbers<[1], [0], [0], [1], [0, 0, 1, 1], [], []>} : vector<16x128xbf16>, vector<128x128xbf16>, vector<16x128xf32> -> vector<16x128xf32>
    %c0_21 = arith.constant 0 : index
    %c0_22 = arith.constant 0 : index
    %28 = vector.load %arg9[%c0_21, %c0_22] : memref<1x128xf32, #tpu.memory_space<vmem>>, vector<1x128xf32>
    %29 = vector.broadcast %28 : vector<1x128xf32> to vector<16x128xf32>
    %30 = arith.addf %27, %29 : vector<16x128xf32>
    %31 = vector.extract_strided_slice %21 {offsets = [0, 128], sizes = [16, 128], strides = [1, 1]} : vector<16x256xf32> to vector<16x128xf32>
    %32 = tpu.concatenate %30, %31 in 1 : vector<16x128xf32>, vector<16x128xf32> -> vector<16x256xf32>
    %33 = arith.truncf %32 : vector<16x256xf32> to vector<16x256xbf16>
    %c0_23 = arith.constant 0 : index
    %c0_24 = arith.constant 0 : index
    %34 = vector.load %arg10[%c0_23, %c0_24] : memref<16x256xbf16, #tpu.memory_space<vmem>>, vector<16x256xbf16>
    tpu.vector_store %arg10[%c0_23, %c0_24], %33 {strides = array<i32>} : memref<16x256xbf16, #tpu.memory_space<vmem>>, vector<16x256xbf16>,
    return
  }
  func.func @transform_0(%arg0: i32) -> (i32, i32) {
    %c0_i32 = arith.constant 0 : i32
    %c0_i32_0 = arith.constant 0 : i32
    return %arg0, %c0_i32 : i32, i32
  }
  func.func @transform_1(%arg0: i32) -> (i32, i32) {
    %c0_i32 = arith.constant 0 : i32
    %c0_i32_0 = arith.constant 0 : i32
    %c0_i32_1 = arith.constant 0 : i32
    return %c0_i32, %c0_i32_0 : i32, i32
  }
  func.func @transform_2(%arg0: i32) -> (i32, i32) {
    %c0_i32 = arith.constant 0 : i32
    %c0_i32_0 = arith.constant 0 : i32
    %c0_i32_1 = arith.constant 0 : i32
    return %c0_i32, %c0_i32_0 : i32, i32
  }
  func.func @transform_3(%arg0: i32) -> (i32, i32) {
    %c0_i32 = arith.constant 0 : i32
    %c0_i32_0 = arith.constant 0 : i32
    %c0_i32_1 = arith.constant 0 : i32
    return %c0_i32, %c0_i32_0 : i32, i32
  }
  func.func @transform_4(%arg0: i32) -> (i32, i32) {
    %c0_i32 = arith.constant 0 : i32
    %c0_i32_0 = arith.constant 0 : i32
    %c0_i32_1 = arith.constant 0 : i32
    return %c0_i32, %c0_i32_0 : i32, i32
  }
  func.func @transform_5(%arg0: i32) -> (i32, i32) {
    %c0_i32 = arith.constant 0 : i32
    %c0_i32_0 = arith.constant 0 : i32
    %c0_i32_1 = arith.constant 0 : i32
    return %c0_i32, %c0_i32_0 : i32, i32
  }
  func.func @transform_6(%arg0: i32) -> (i32, i32) {
    %c0_i32 = arith.constant 0 : i32
    %c0_i32_0 = arith.constant 0 : i32
    %c0_i32_1 = arith.constant 0 : i32
    return %c0_i32, %c0_i32_0 : i32, i32
  }
  func.func @transform_7(%arg0: i32) -> (i32, i32) {
    %c0_i32 = arith.constant 0 : i32
    %c0_i32_0 = arith.constant 0 : i32
    %c0_i32_1 = arith.constant 0 : i32
    return %c0_i32, %c0_i32_0 : i32, i32
  }
  func.func @transform_8(%arg0: i32) -> (i32, i32) {
    %c0_i32 = arith.constant 0 : i32
    %c0_i32_0 = arith.constant 0 : i32
    %c0_i32_1 = arith.constant 0 : i32
    return %c0_i32, %c0_i32_0 : i32, i32
  }
  func.func @transform_9(%arg0: i32) -> (i32, i32) {
    %c0_i32 = arith.constant 0 : i32
    %c0_i32_0 = arith.constant 0 : i32
    return %arg0, %c0_i32 : i32, i32
  }
}

module attributes {stable_mosaic.version = 11 : i64} {
  func.func @_ae_classifier_kernel(%arg0: i32, %arg1: memref<16x128xbf16, #tpu.memory_space<vmem>>, %arg2: memref<128x128xbf16, #tpu.memory_space<vmem>>, %arg3: memref<1x128xf32, #tpu.memory_space<vmem>>, %arg4: memref<128x128xbf16, #tpu.memory_space<vmem>>, %arg5: memref<1x128xf32, #tpu.memory_space<vmem>>, %arg6: memref<128x256xbf16, #tpu.memory_space<vmem>>, %arg7: memref<1x256xf32, #tpu.memory_space<vmem>>, %arg8: memref<128x128xbf16, #tpu.memory_space<vmem>>, %arg9: memref<1x128xf32, #tpu.memory_space<vmem>>, %arg10: memref<16x256xbf16, #tpu.memory_space<vmem>>) attributes {dimension_semantics = [#tpu.dimension_semantics<parallel>], iteration_bounds = array<i64: 1>, scalar_prefetch = 0 : i64, scratch_operands = 0 : i64, tpu.core_type = #tpu.core_type<tc>, window_params = [{transform_indices = @transform_0, window_bounds = array<i64: 16, 128>}, {pipeline_mode = #tpu.pipeline_mode<synchronous>, transform_indices = @transform_1, window_bounds = array<i64: 128, 128>}, {pipeline_mode = #tpu.pipeline_mode<synchronous>, transform_indices = @transform_2, window_bounds = array<i64: 1, 128>}, {pipeline_mode = #tpu.pipeline_mode<synchronous>, transform_indices = @transform_3, window_bounds = array<i64: 128, 128>}, {pipeline_mode = #tpu.pipeline_mode<synchronous>, transform_indices = @transform_4, window_bounds = array<i64: 1, 128>}, {pipeline_mode = #tpu.pipeline_mode<synchronous>, transform_indices = @transform_5, window_bounds = array<i64: 128, 256>}, {pipeline_mode = #tpu.pipeline_mode<synchronous>, transform_indices = @transform_6, window_bounds = array<i64: 1, 256>}, {pipeline_mode = #tpu.pipeline_mode<synchronous>, transform_indices = @transform_7, window_bounds = array<i64: 128, 128>}, {pipeline_mode = #tpu.pipeline_mode<synchronous>, transform_indices = @transform_8, window_bounds = array<i64: 1, 128>}, {transform_indices = @transform_9, window_bounds = array<i64: 16, 256>}]} {
    %c0 = arith.constant 0 : index
    %c0_0 = arith.constant 0 : index
    %0 = vector.load %arg1[%c0, %c0_0] : memref<16x128xbf16, #tpu.memory_space<vmem>>, vector<16x128xbf16>
    %c0_1 = arith.constant 0 : index
    %c0_2 = arith.constant 0 : index
    %1 = vector.load %arg2[%c0_1, %c0_2] : memref<128x128xbf16, #tpu.memory_space<vmem>>, vector<128x128xbf16>
    %cst = arith.constant dense<0.000000e+00> : vector<16x128xf32>
    %2 = tpu.matmul %0, %1, %cst {dimension_numbers = #tpu.dot_dimension_numbers<[1], [0], [0], [1], [0, 0, 1, 1], [], []>} : vector<16x128xbf16>, vector<128x128xbf16>, vector<16x128xf32> -> vector<16x128xf32>
    %c0_3 = arith.constant 0 : index
    %c0_4 = arith.constant 0 : index
    %3 = vector.load %arg3[%c0_3, %c0_4] : memref<1x128xf32, #tpu.memory_space<vmem>>, vector<1x128xf32>
    %4 = vector.broadcast %3 : vector<1x128xf32> to vector<16x128xf32>
    %5 = arith.addf %2, %4 : vector<16x128xf32>
    %cst_5 = arith.constant 0.000000e+00 : f32
    %6 = vector.broadcast %cst_5 : f32 to vector<16x128xf32>
    %7 = arith.maximumf %5, %6 : vector<16x128xf32>
    %8 = arith.truncf %7 : vector<16x128xf32> to vector<16x128xbf16>
    %c0_6 = arith.constant 0 : index
    %c0_7 = arith.constant 0 : index
    %9 = vector.load %arg4[%c0_6, %c0_7] : memref<128x128xbf16, #tpu.memory_space<vmem>>, vector<128x128xbf16>
    %cst_8 = arith.constant dense<0.000000e+00> : vector<16x128xf32>
    %10 = tpu.matmul %8, %9, %cst_8 {dimension_numbers = #tpu.dot_dimension_numbers<[1], [0], [0], [1], [0, 0, 1, 1], [], []>} : vector<16x128xbf16>, vector<128x128xbf16>, vector<16x128xf32> -> vector<16x128xf32>
    %c0_9 = arith.constant 0 : index
    %c0_10 = arith.constant 0 : index
    %11 = vector.load %arg5[%c0_9, %c0_10] : memref<1x128xf32, #tpu.memory_space<vmem>>, vector<1x128xf32>
    %12 = vector.broadcast %11 : vector<1x128xf32> to vector<16x128xf32>
    %13 = arith.addf %10, %12 : vector<16x128xf32>
    %cst_11 = arith.constant 0.000000e+00 : f32
    %14 = vector.broadcast %cst_11 : f32 to vector<16x128xf32>
    %15 = arith.maximumf %13, %14 : vector<16x128xf32>
    %16 = arith.truncf %15 : vector<16x128xf32> to vector<16x128xbf16>
    %c0_12 = arith.constant 0 : index
    %c0_13 = arith.constant 0 : index
    %17 = vector.load %arg6[%c0_12, %c0_13] : memref<128x256xbf16, #tpu.memory_space<vmem>>, vector<128x256xbf16>
    %cst_14 = arith.constant dense<0.000000e+00> : vector<16x256xf32>
    %18 = tpu.matmul %16, %17, %cst_14 {dimension_numbers = #tpu.dot_dimension_numbers<[1], [0], [0], [1], [0, 0, 1, 1], [], []>} : vector<16x128xbf16>, vector<128x256xbf16>, vector<16x256xf32> -> vector<16x256xf32>
    %c0_15 = arith.constant 0 : index
    %c0_16 = arith.constant 0 : index
    %19 = vector.load %arg7[%c0_15, %c0_16] : memref<1x256xf32, #tpu.memory_space<vmem>>, vector<1x256xf32>
    %20 = vector.broadcast %19 : vector<1x256xf32> to vector<16x256xf32>
    %21 = arith.addf %18, %20 : vector<16x256xf32>
    %22 = vector.extract_strided_slice %21 {offsets = [0, 0], sizes = [16, 128], strides = [1, 1]} : vector<16x256xf32> to vector<16x128xf32>
    %cst_17 = arith.constant 0.000000e+00 : f32
    %23 = vector.broadcast %cst_17 : f32 to vector<16x128xf32>
    %24 = arith.maximumf %22, %23 : vector<16x128xf32>
    %25 = arith.truncf %24 : vector<16x128xf32> to vector<16x128xbf16>
    %c0_18 = arith.constant 0 : index
    %c0_19 = arith.constant 0 : index
    %26 = vector.load %arg8[%c0_18, %c0_19] : memref<128x128xbf16, #tpu.memory_space<vmem>>, vector<128x128xbf16>
    %cst_20 = arith.constant dense<0.000000e+00> : vector<16x128xf32>
    %27 = tpu.matmul %25, %26, %cst_20 {dimension_numbers = #tpu.dot_dimension_numbers<[1], [0], [0], [1], [0, 0, 1, 1], [], []>} : vector<16x128xbf16>, vector<128x128xbf16>, vector<16x128xf32> -> vector<16x128xf32>
    %c0_21 = arith.constant 0 : index
    %c0_22 = arith.constant 0 : index
    %28 = vector.load %arg9[%c0_21, %c0_22] : memref<1x128xf32, #tpu.memory_space<vmem>>, vector<1x128xf32>
    %29 = vector.broadcast %28 : vector<1x128xf32> to vector<16x128xf32>
    %30 = arith.addf %27, %29 : vector<16x128xf32>
    %31 = vector.extract_strided_slice %21 {offsets = [0, 128], sizes = [16, 128], strides = [1, 1]} : vector<16x256xf32> to vector<16x128xf32>
    %32 = tpu.concatenate %30, %31 in 1 : vector<16x128xf32>, vector<16x128xf32> -> vector<16x256xf32>
    %33 = arith.truncf %32 : vector<16x256xf32> to vector<16x256xbf16>
    %c0_23 = arith.constant 0 : index
    %c0_24 = arith.constant 0 : index
    %34 = vector.load %arg10[%c0_23, %c0_24] : memref<16x256xbf16, #tpu.memory_space<vmem>>, vector<16x256xbf16>
    tpu.vector_store %arg10[%c0_23, %c0_24], %33 {strides = array<i32>} : memref<16x256xbf16, #tpu.memory_space<vmem>>, vector<16x256xbf16>,
    return
  }
  func.func @transform_0(%arg0: i32) -> (i32, i32) {
    %c0_i32 = arith.constant 0 : i32
    %c0_i32_0 = arith.constant 0 : i32
    return %arg0, %c0_i32 : i32, i32
  }
  func.func @transform_1(%arg0: i32) -> (i32, i32) {
    %c0_i32 = arith.constant 0 : i32
    %c0_i32_0 = arith.constant 0 : i32
    %c0_i32_1 = arith.constant 0 : i32
    return %c0_i32, %c0_i32_0 : i32, i32
  }
  func.func @transform_2(%arg0: i32) -> (i32, i32) {
    %c0_i32 = arith.constant 0 : i32
    %c0_i32_0 = arith.constant 0 : i32
    %c0_i32_1 = arith.constant 0 : i32
    return %c0_i32, %c0_i32_0 : i32, i32
  }
  func.func @transform_3(%arg0: i32) -> (i32, i32) {
    %c0_i32 = arith.constant 0 : i32
    %c0_i32_0 = arith.constant 0 : i32
    %c0_i32_1 = arith.constant 0 : i32
    return %c0_i32, %c0_i32_0 : i32, i32
  }
  func.func @transform_4(%arg0: i32) -> (i32, i32) {
    %c0_i32 = arith.constant 0 : i32
    %c0_i32_0 = arith.constant 0 : i32
    %c0_i32_1 = arith.constant 0 : i32
    return %c0_i32, %c0_i32_0 : i32, i32
  }
  func.func @transform_5(%arg0: i32) -> (i32, i32) {
    %c0_i32 = arith.constant 0 : i32
    %c0_i32_0 = arith.constant 0 : i32
    %c0_i32_1 = arith.constant 0 : i32
    return %c0_i32, %c0_i32_0 : i32, i32
  }
  func.func @transform_6(%arg0: i32) -> (i32, i32) {
    %c0_i32 = arith.constant 0 : i32
    %c0_i32_0 = arith.constant 0 : i32
    %c0_i32_1 = arith.constant 0 : i32
    return %c0_i32, %c0_i32_0 : i32, i32
  }
  func.func @transform_7(%arg0: i32) -> (i32, i32) {
    %c0_i32 = arith.constant 0 : i32
    %c0_i32_0 = arith.constant 0 : i32
    %c0_i32_1 = arith.constant 0 : i32
    return %c0_i32, %c0_i32_0 : i32, i32
  }
  func.func @transform_8(%arg0: i32) -> (i32, i32) {
    %c0_i32 = arith.constant 0 : i32
    %c0_i32_0 = arith.constant 0 : i32
    %c0_i32_1 = arith.constant 0 : i32
    return %c0_i32, %c0_i32_0 : i32, i32
  }
  func.func @transform_9(%arg0: i32) -> (i32, i32) {
    %c0_i32 = arith.constant 0 : i32
    %c0_i32_0 = arith.constant 0 : i32
    return %arg0, %c0_i32 : i32, i32
  }
}

</mosaic_0001>

<bundles_post_ra>
// kernel: tpu_custom_call.1
= control target key start
LH: loop header
LB: loop body
LE: loop exit
PB: predicated region body
PF: predicated region fallthrough
CT: control target
= control target key end

     0   :  { %14 = vsyncpa [#allocation3], 0  ;;  %s1105_s0 = inlined_call_operand.hbm [shape: bf16[16,128], index: 0, kind: input, shape index: {}]   ;;  %s1106_s1 = inlined_call_operand.hbm [shape: bf16[128,128], index: 1, kind: input, shape index: {}]   ;;  %s1107_s2 = inlined_call_operand.vmem [shape: f32[1,128], index: 2, kind: input, shape index: {}]   ;;  %s1108_s3 = inlined_call_operand.hbm [shape: bf16[128,128], index: 3, kind: input, shape index: {}]   ;;  %s1109_s4 = inlined_call_operand.vmem [shape: f32[1,128], index: 4, kind: input, shape index: {}]   ;;  %s1110_s5 = inlined_call_operand.hbm [shape: bf16[128,256], index: 5, kind: input, shape index: {}]   ;;  %s1111_s6 = inlined_call_operand.vmem [shape: f32[1,256], index: 6, kind: input, shape index: {}]   ;;  %s1112_s7 = inlined_call_operand.hbm [shape: bf16[128,128], index: 7, kind: input, shape index: {}]   ;;  %s1113_s8 = inlined_call_operand.vmem [shape: f32[1,128], index: 8, kind: input, shape index: {}]   ;;  %s1114_s9 = inlined_call_operand.hbm [shape: bf16[16,256], index: 9, kind: output, shape index: {}]  }
   0x1   :  { %15 = vsyncpa [#allocation6], 0 }
   0x2   :  { %16 = vsyncpa [#allocation9], 0 }
   0x3   :  { %17 = vsyncpa [#allocation4], 0  ;;  %s964_s30 = smov [#allocation5]   ;;  %s965_s11 = smov [#allocation8]  }
   0x4   :  { %s35_s10 = sshll.u32 %s964_s30, 4  ;;  %s63_s12 = sshll.u32 %s965_s11, 4  ;;  %s36_s10 = int_to_ptr.vmem [resolvable:$true] %s35_s10  ;;  %s64_s12 = int_to_ptr.vmem [resolvable:$true] %s63_s12 }
   0x5   :  { %s844_s13 = scalar_lea.vmem %s36_s10, 1024  ;;  %p849_p1 = scmp.lt.s32.totalorder %s36_s10, %s36_s10 }
   0x6   :  { %p845_p0 = scmp.ne.s32.totalorder %s36_s10, %s844_s13  ;;  %p850_p2 = scmp.lt.s32.totalorder %s844_s13, %s844_s13 }
   0x8   :  { %p851_p3 = por %p850_p2, %p849_p1 }
   0xa   :  { %p852_p4 = pnand %p851_p3, %p845_p0 }
   0xc   :  { %855 = shalt.err (!%p852_p4)
}
   0xd   :  { %s966_s14 = smov 64   ;;  %s967_s15 = smov 4  }
   0xe   :  { %41 = dma.hbm_to_vmem [thread:$0]  %s1106_s1, 1024, %s36_s10, [#allocation6], %s966_s14, %s966_s14, %s967_s15  }
   0xf   :  { %s864_s18 = scalar_lea.vmem %s64_s12, 2048  ;;  %p869_p6 = scmp.lt.s32.totalorder %s64_s12, %s64_s12 }
  0x10   :  { %p865_p5 = scmp.ne.s32.totalorder %s64_s12, %s864_s18  ;;  %p870_p7 = scmp.lt.s32.totalorder %s864_s18, %s864_s18 }
  0x12   :  { %p871_p8 = por %p870_p7, %p869_p6 }
  0x14   :  { %p872_p9 = pnand %p871_p8, %p865_p5 }
  0x16   :  { %875 = shalt.err (!%p872_p9)
}
  0x17   :  { %s968_s19 = smov 128   ;;  %s969_s20 = smov 8  }
  0x18   :  { %69 = dma.hbm_to_vmem [thread:$0]  %s1110_s5, 2048, %s64_s12, [#allocation9], %s968_s19, %s968_s19, %s969_s20  }
  0x19   :  { %s970_s23 = smov [#allocation2]   ;;  %s971_s25 = smov [#allocation7]  }
  0x1a   :  { %s23_s24 = sshll.u32 %s970_s23, 4  ;;  %s49_s1 = sshll.u32 %s971_s25, 4  ;;  %s24_s24 = int_to_ptr.vmem [resolvable:$true] %s23_s24  ;;  %s50_s1 = int_to_ptr.vmem [resolvable:$true] %s49_s1 }
  0x1b   :  { %s884_s26 = scalar_lea.vmem %s24_s24, 128  ;;  %p889_p11 = scmp.lt.s32.totalorder %s24_s24, %s24_s24 }
  0x1c   :  { %p885_p10 = scmp.ne.s32.totalorder %s24_s24, %s884_s26  ;;  %p890_p12 = scmp.lt.s32.totalorder %s884_s26, %s884_s26 }
  0x1e   :  { %p891_p13 = por %p890_p12, %p889_p11 }
  0x20   :  { %p892_p0 = pnand %p891_p13, %p885_p10 }
  0x22   :  { %895 = shalt.err (!%p892_p0)
}
  0x23   :  { %29 = dma.hbm_to_vmem [thread:$0]  %s1105_s0, 128, %s24_s24, [#allocation3], %s966_s14, %s966_s14, %s967_s15  }
  0x24   :  { %s904_s5 = scalar_lea.vmem %s50_s1, 1024  ;;  %p909_p2 = scmp.lt.s32.totalorder %s50_s1, %s50_s1 }
  0x25   :  { %p905_p1 = scmp.ne.s32.totalorder %s50_s1, %s904_s5  ;;  %p910_p3 = scmp.lt.s32.totalorder %s904_s5, %s904_s5 }
  0x27   :  { %p911_p4 = por %p910_p3, %p909_p2 }
  0x29   :  { %p912_p5 = pnand %p911_p4, %p905_p1 }
  0x2b   :  { %915 = shalt.err (!%p912_p5)
}
  0x2c   :  { %55 = dma.hbm_to_vmem [thread:$0]  %s1108_s3, 1024, %s50_s1, [#allocation6], %s966_s14, %s966_s14, %s967_s15  }
  0x2d   :  { %s972_s10 = smov [#allocation10]  }
  0x2e   :  { %s77_s11 = sshll.u32 %s972_s10, 4  ;;  %s78_s11 = int_to_ptr.vmem [resolvable:$true] %s77_s11 }
  0x2f   :  { %s924_s12 = scalar_lea.vmem %s78_s11, 1024  ;;  %p929_p7 = scmp.lt.s32.totalorder %s78_s11, %s78_s11 }
  0x30   :  { %p925_p6 = scmp.ne.s32.totalorder %s78_s11, %s924_s12  ;;  %p930_p8 = scmp.lt.s32.totalorder %s924_s12, %s924_s12 }
  0x32   :  { %p931_p9 = por %p930_p8, %p929_p7 }
  0x34   :  { %p932_p10 = pnand %p931_p9, %p925_p6 }
  0x36   :  { %935 = shalt.err (!%p932_p10)
}
  0x37   :  { %83 = dma.hbm_to_vmem [thread:$0]  %s1112_s7, 1024, %s78_s11, [#allocation9], %s966_s14, %s966_s14, %s967_s15  }
  0x38   :  { %956 = dma.done.wait [#allocation3], 128  }
  0x39   :  { %957 = vsyncadd [#allocation3], 4294967168 }
  0x3a   :  { %958 = dma.done.wait [#allocation6], 2048  }
  0x3b   :  { %959 = vsyncadd [#allocation6], 4294965248 }
  0x3c   :  { %960 = dma.done.wait [#allocation9], 3072  }
  0x3d   :  { %961 = vsyncadd [#allocation9], 4294964224  ;;  %v973_v0 = vmov 0.0   ;;  %vm974_vm0 = vmmov 0   ;;  %v787_v1 = vld [vmem:[#allocation5 + $0x38] sm:$0xff]   ;;  %v788_v2 = vld [vmem:[#allocation5 + $0x30] sm:$0xff]   ;;  %v358_v63 = vlaneseq }
  0x3e   :  { %714 = vmatprep.subr.bf16.mxu0 %v973_v0  ;;  %730 = vmatprep.mubr.msk.bf16.mxu0 %vm974_vm0, %v973_v0  ;;  %v789_v3 = vld [vmem:[#allocation5 + $0x28] sm:$0xff]   ;;  %v796_v4 = vld [vmem:[#allocation7 + $0x38] sm:$0xff]   ;;  %v790_v5 = vld [vmem:[#allocation5 + $0x20] sm:$0xff]   ;;  %v975_v44 = vmov 0  }
  0x3f   :  { %734 = vmatprep.subr.bf16.mxu1 %v973_v0  ;;  %750 = vmatprep.mubr.msk.bf16.mxu1 %vm974_vm0, %v973_v0  ;;  %v797_v6 = vld [vmem:[#allocation7 + $0x30] sm:$0xff]   ;;  %v791_v7 = vld [vmem:[#allocation5 + $0x18] sm:$0xff]   ;;  %v798_v8 = vld [vmem:[#allocation7 + $0x28] sm:$0xff]  }
  0x40   :  { %715 = vmatpush3.bf16.msra.mxu0 %v787_v1  ;;  %735 = vmatpush3.bf16.msra.mxu1 %v796_v4  ;;  %v792_v9 = vld [vmem:[#allocation5 + $0x10] sm:$0xff]   ;;  %v799_v10 = vld [vmem:[#allocation7 + $0x20] sm:$0xff]   ;;  %v793_v11 = vld [vmem:[#allocation5 + $0x8] sm:$0xff]   ;;  %v359_v1 = vshrl.u32 %v358_v63, 7 }
  0x41   :  { %716 = vmatprep.subr.bf16.mxu0 %v973_v0  ;;  %736 = vmatprep.subr.bf16.mxu1 %v973_v0  ;;  %v800_v12 = vld [vmem:[#allocation7 + $0x18] sm:$0xff]   ;;  %v794_v13 = vld [vmem:[#allocation5] sm:$0xff]   ;;  %v801_v15 = vld [vmem:[#allocation7 + $0x10] sm:$0xff]  }
  0x42   :  { %v795_v14 = vld [vmem:[#allocation2] sm:$0xff]   ;;  %v802_v16 = vld [vmem:[#allocation7 + $0x8] sm:$0xff]   ;;  %v803_v17 = vld [vmem:[#allocation7] sm:$0xff]  }
  0x43   :  { %v804_v18 = vld [vmem:[#allocation8 + $0x70] ss:$8 sps:$4 sm:$0xff]   ;;  %v806_v19 = vld [vmem:[#allocation8 + $0x74] ss:$8 sps:$4 sm:$0xff]   ;;  %v809_v20 = vld [vmem:[#allocation8 + $0x64] ss:$8 sps:$4 sm:$0xff]  }
  0x44   :  { %717 = vmatpush3.bf16.msra.mxu0 %v788_v2  ;;  %737 = vmatpush3.bf16.msra.mxu1 %v797_v6  ;;  %v807_v21 = vld [vmem:[#allocation8 + $0x60] ss:$8 sps:$4 sm:$0xff]   ;;  %v812_v22 = vld [vmem:[#allocation8 + $0x54] ss:$8 sps:$4 sm:$0xff]   ;;  %v810_v23 = vld [vmem:[#allocation8 + $0x50] ss:$8 sps:$4 sm:$0xff]  }
  0x45   :  { %718 = vmatprep.subr.bf16.mxu0 %v973_v0  ;;  %738 = vmatprep.subr.bf16.mxu1 %v973_v0  ;;  %v815_v24 = vld [vmem:[#allocation8 + $0x44] ss:$8 sps:$4 sm:$0xff]   ;;  %v813_v25 = vld [vmem:[#allocation8 + $0x40] ss:$8 sps:$4 sm:$0xff]   ;;  %v818_v26 = vld [vmem:[#allocation8 + $0x34] ss:$8 sps:$4 sm:$0xff]  }
  0x46   :  { %v816_v27 = vld [vmem:[#allocation8 + $0x30] ss:$8 sps:$4 sm:$0xff]   ;;  %v821_v28 = vld [vmem:[#allocation8 + $0x24] ss:$8 sps:$4 sm:$0xff]   ;;  %v819_v29 = vld [vmem:[#allocation8 + $0x20] ss:$8 sps:$4 sm:$0xff]  }
  0x47   :  { %v639_v30 = vld [vmem:[%s1107_s2] ss:$0 sm:$0xff]  ;;  %v824_v40 = vld [vmem:[#allocation8 + $0x14] ss:$8 sps:$4 sm:$0xff]   ;;  %v827_v42 = vld [vmem:[#allocation8 + $0x4] ss:$8 sps:$4 sm:$0xff]  }
  0x48   :  { %719 = vmatpush3.bf16.msra.mxu0 %v789_v3  ;;  %739 = vmatpush3.bf16.msra.mxu1 %v798_v8  ;;  %v822_v41 = vld [vmem:[#allocation8 + $0x10] ss:$8 sps:$4 sm:$0xff]   ;;  %v825_v43 = vld [vmem:[#allocation8] ss:$8 sps:$4 sm:$0xff]   ;;  %v360_v2 = vsub.s32 0, %v359_v1 }
  0x49   :  { %720 = vmatprep.subr.bf16.mxu0 %v973_v0  ;;  %740 = vmatprep.subr.bf16.mxu1 %v973_v0  ;;  %v828_v45 = vld [vmem:[#allocation10 + $0x38] sm:$0xff]   ;;  %v829_v46 = vld [vmem:[#allocation10 + $0x30] sm:$0xff]   ;;  %v830_v47 = vld [vmem:[#allocation10 + $0x28] sm:$0xff]  }
  0x4a   :  { %v831_v48 = vld [vmem:[#allocation10 + $0x20] sm:$0xff]   ;;  %v832_v49 = vld [vmem:[#allocation10 + $0x18] sm:$0xff]   ;;  %v833_v60 = vld [vmem:[#allocation10 + $0x10] sm:$0xff]  }
  0x4b   :  { %v649_v50 = vld [vmem:[%s1109_s4] ss:$0 sm:$0xff]  ;;  %v834_v61 = vld [vmem:[#allocation10 + $0x8] sm:$0xff]   ;;  %v835_v62 = vld [vmem:[#allocation10] sm:$0xff]  }
  0x4c   :  { %721 = vmatpush3.bf16.msra.mxu0 %v790_v5  ;;  %741 = vmatpush3.bf16.msra.mxu1 %v799_v10  ;;  %v356_v3 = vld [vmem:[%s1111_s6] sm:$0x3]  ;;  %s976_s6 = smov [#allocation11]  }
  0x4d   :  { %722 = vmatprep.subr.bf16.mxu0 %v973_v0  ;;  %742 = vmatprep.subr.bf16.mxu1 %v973_v0  ;;  %v361_v4 = vrot.slane %v356_v3, %v360_v2  ;;  %s625_s18 = sshll.u32 %s976_s6, 4  ;;  %s626_s18 = int_to_ptr.vmem [resolvable:$true] %s625_s18 }
  0x4e   :  { %s936_s21 = scalar_lea.vmem %s626_s18, 256  ;;  %p941_p12 = scmp.lt.s32.totalorder %s626_s18, %s626_s18 }
  0x4f   :  { %p937_p11 = scmp.ne.s32.totalorder %s626_s18, %s936_s21  ;;  %p942_p13 = scmp.lt.s32.totalorder %s936_s21, %s936_s21 }
  0x50   :  { %723 = vmatpush3.bf16.msra.mxu0 %v791_v7  ;;  %743 = vmatpush3.bf16.msra.mxu1 %v800_v12 }
  0x51   :  { %724 = vmatprep.subr.bf16.mxu0 %v973_v0  ;;  %744 = vmatprep.subr.bf16.mxu1 %v973_v0  ;;  %p943_p0 = por %p942_p13, %p941_p12 }
  0x53   :  { %p944_p1 = pnand %p943_p0, %p937_p11 }
  0x54   :  { %725 = vmatpush3.bf16.msra.mxu0 %v792_v9  ;;  %745 = vmatpush3.bf16.msra.mxu1 %v801_v15 }
  0x55   :  { %726 = vmatprep.subr.bf16.mxu0 %v973_v0  ;;  %746 = vmatprep.subr.bf16.mxu1 %v973_v0 }
  0x58   :  { %727 = vmatpush3.bf16.msra.mxu0 %v793_v11  ;;  %747 = vmatpush3.bf16.msra.mxu1 %v802_v16 }
  0x59   :  { %728 = vmatprep.subr.bf16.mxu0 %v973_v0  ;;  %748 = vmatprep.subr.bf16.mxu1 %v973_v0 }
  0x5c   :  { %729 = vmatpush3.bf16.msra.mxu0 %v794_v13  ;;  %749 = vmatpush3.bf16.msra.mxu1 %v803_v17 }
  0x5d   :  { %754 = vmatprep.subr.bf16.mxu1 %v973_v0  ;;  %448 = vmatprep.subr.bf16.mxu0 %v806_v19 }
  0x5f   :  { %731 = vmatmul.mubr.bf16.vlgmr.msra.gmra.mxu0 %v795_v14  ;;  %v674_v14 = vld [vmem:[%s1113_s8] ss:$0 sm:$0xff] }
  0x60   :  { %449 = vmatpush1.bf16.msra.mxu0 %v804_v18  ;;  %480 = vmatprep.mubr.bf16.mxu0 %v975_v44 }
  0x61   :  { %450 = vmatprep.subr.bf16.mxu0 %v809_v20 }
  0x64   :  { %451 = vmatpush1.bf16.msra.mxu0 %v807_v21 }
  0x65   :  { %452 = vmatprep.subr.bf16.mxu0 %v812_v22 }
  0x68   :  { %453 = vmatpush1.bf16.msra.mxu0 %v810_v23 }
  0x69   :  { %454 = vmatprep.subr.bf16.mxu0 %v815_v24 }
  0x6c   :  { %455 = vmatpush1.bf16.msra.mxu0 %v813_v25 }
  0x6d   :  { %456 = vmatprep.subr.bf16.mxu0 %v818_v26 }
  0x70   :  { %457 = vmatpush1.bf16.msra.mxu0 %v816_v27 }
  0x71   :  { %458 = vmatprep.subr.bf16.mxu0 %v821_v28 }
  0x74   :  { %459 = vmatpush1.bf16.msra.mxu0 %v819_v29 }
  0x75   :  { %460 = vmatprep.subr.bf16.mxu0 %v824_v40 }
  0x78   :  { %461 = vmatpush1.bf16.msra.mxu0 %v822_v41 }
  0x79   :  { %462 = vmatprep.subr.bf16.mxu0 %v827_v42 }
  0x7c   :  { %463 = vmatpush1.bf16.msra.mxu0 %v825_v43 }
 0x11f   :  { %v215_v31 = vpop.f32.mrf.mxu0 }
 0x120   :  { %v216_v33 = vadd.f32 %v639_v30, %v215_v31 }
 0x121   :  { %v732_v32 = vpop.f32.mrf.mxu0 }
 0x122   :  { %v222_v37 = vmax.f32 %v216_v33, 0.0 }
 0x123   :  { %v218_v34 = vpop.f32.mrf.mxu0 }
 0x124   :  { %v219_v35 = vadd.f32 %v639_v30, %v218_v34 }
 0x125   :  { %v733_v36 = vpop.f32.mrf.mxu0 }
 0x126   :  { %v223_v38 = vmax.f32 %v219_v35, 0.0 }
 0x128   :  { %v224_v39 = vpack.c.bf16 %v223_v38, %v222_v37 }
 0x12a   :  { %751 = vmatmul.mubr.bf16.vlgmr.msra.gmra.mxu1 %v224_v39 }
 0x12b   :  { %770 = vmatprep.mubr.msk.bf16.mxu1 %vm974_vm0, %v973_v0  ;;  %755 = vmatpush3.bf16.msra.mxu1 %v828_v45 }
 0x12c   :  { %756 = vmatprep.subr.bf16.mxu1 %v973_v0 }
 0x12f   :  { %757 = vmatpush3.bf16.msra.mxu1 %v829_v46 }
 0x130   :  { %758 = vmatprep.subr.bf16.mxu1 %v973_v0 }
 0x133   :  { %759 = vmatpush3.bf16.msra.mxu1 %v830_v47 }
 0x134   :  { %760 = vmatprep.subr.bf16.mxu1 %v973_v0 }
 0x137   :  { %761 = vmatpush3.bf16.msra.mxu1 %v831_v48 }
 0x138   :  { %762 = vmatprep.subr.bf16.mxu1 %v973_v0 }
 0x13b   :  { %763 = vmatpush3.bf16.msra.mxu1 %v832_v49 }
 0x13c   :  { %764 = vmatprep.subr.bf16.mxu1 %v973_v0 }
 0x13f   :  { %765 = vmatpush3.bf16.msra.mxu1 %v833_v60 }
 0x140   :  { %766 = vmatprep.subr.bf16.mxu1 %v973_v0 }
 0x143   :  { %767 = vmatpush3.bf16.msra.mxu1 %v834_v61 }
 0x144   :  { %768 = vmatprep.subr.bf16.mxu1 %v973_v0  ;;  %v364_v0 = vsub.s32 1, %v359_v1 }
 0x146   :  { %v365_v13 = vrot.slane %v356_v3, %v364_v0 }
 0x147   :  { %769 = vmatpush3.bf16.msra.mxu1 %v835_v62 }
 0x1ea   :  { %v330_v51 = vpop.f32.mrf.mxu1 }
 0x1eb   :  { %v331_v53 = vadd.f32 %v649_v50, %v330_v51 }
 0x1ec   :  { %v752_v52 = vpop.f32.mrf.mxu1 }
 0x1ed   :  { %v337_v57 = vmax.f32 %v331_v53, 0.0 }
 0x1ee   :  { %v333_v54 = vpop.f32.mrf.mxu1 }
 0x1ef   :  { %v334_v55 = vadd.f32 %v649_v50, %v333_v54 }
 0x1f0   :  { %v753_v56 = vpop.f32.mrf.mxu1 }
 0x1f1   :  { %v338_v58 = vmax.f32 %v334_v55, 0.0 }
 0x1f3   :  { %v339_v59 = vpack.c.bf16 %v338_v58, %v337_v57 }
 0x1f5   :  { %481 = vmatmul.mubr.bf16.vlgmr.msra.gmra.mxu0 %v339_v59 }
 0x2b5   :  { %v482_v5 = vpop.f32.mrf.mxu0 }
 0x2b6   :  { %v483_v7 = vadd.f32 %v482_v5, %v361_v4 }
 0x2b7   :  { %v484_v6 = vpop.f32.mrf.mxu0 }
 0x2b8   :  { %v491_v10 = vmax.f32 %v483_v7, 0.0  ;;  %v485_v16 = vadd.f32 %v484_v6, %v365_v13 }
 0x2b9   :  { %v486_v8 = vpop.f32.mrf.mxu0 }
 0x2ba   :  { %v487_v9 = vadd.f32 %v486_v8, %v361_v4 }
 0x2bb   :  { %v488_v18 = vpop.f32.mrf.mxu0 }
 0x2bc   :  { %v492_v11 = vmax.f32 %v487_v9, 0.0  ;;  %v489_v22 = vadd.f32 %v488_v18, %v365_v13 }
 0x2be   :  { %v493_v12 = vpack.c.bf16 %v492_v11, %v491_v10 }
 0x2c0   :  { %771 = vmatmul.mubr.bf16.vlgmr.msra.gmra.mxu1 %v493_v12 }
 0x380   :  { %v599_v15 = vpop.f32.mrf.mxu1 }
 0x381   :  { %v600_v17 = vadd.f32 %v674_v14, %v599_v15 }
 0x382   :  { %v772_v19 = vpop.f32.mrf.mxu1 }
 0x383   :  { %v685_v20 = vpack.c.bf16 %v485_v16, %v600_v17 }
 0x384   :  { %v602_v21 = vpop.f32.mrf.mxu1 }
 0x385   :  { %618 = vst [vmem:[#allocation11] sm:$0xff] %v685_v20  ;;  %v603_v23 = vadd.f32 %v674_v14, %v602_v21 }
 0x386   :  { %v773_v24 = vpop.f32.mrf.mxu1 }
 0x387   :  { %v686_v25 = vpack.c.bf16 %v489_v22, %v603_v23 }
 0x389   :  { %619 = vst [vmem:[#allocation11 + $0x8] sm:$0xff] %v686_v25 }
 0x38a   :  { %947 = shalt.err (!%p944_p1)
}
 0x38b   :  { %631 = dma.vmem_to_hbm [thread:$0]  %s626_s18, 256, %s1114_s9, [#allocation4], %s968_s19, %s968_s19, %s969_s20  }
 0x38c   :  { %962 = dma.done.wait [#allocation4], 256  }
 0x38d   :  { %963 = vsyncadd [#allocation4], 4294967040 }
 0x38e   :  { %635 = vsyncpa [#allocation3], 1 }
 0x38f   :  { %636 = vsyncpa [#allocation6], 1 }
 0x390   :  { %637 = vsyncpa [#allocation9], 1 }
 0x391   :  { %638 = vsyncpa [#allocation4], 1 }

// kernel: tpu_custom_call.1
= control target key start
LH: loop header
LB: loop body
LE: loop exit
PB: predicated region body
PF: predicated region fallthrough
CT: control target
= control target key end

     0   :  { %14 = vsyncpa [#allocation3], 0  ;;  %s1105_s0 = inlined_call_operand.hbm [shape: bf16[16,128], index: 0, kind: input, shape index: {}]   ;;  %s1106_s1 = inlined_call_operand.hbm [shape: bf16[128,128], index: 1, kind: input, shape index: {}]   ;;  %s1107_s2 = inlined_call_operand.vmem [shape: f32[1,128], index: 2, kind: input, shape index: {}]   ;;  %s1108_s3 = inlined_call_operand.hbm [shape: bf16[128,128], index: 3, kind: input, shape index: {}]   ;;  %s1109_s4 = inlined_call_operand.vmem [shape: f32[1,128], index: 4, kind: input, shape index: {}]   ;;  %s1110_s5 = inlined_call_operand.hbm [shape: bf16[128,256], index: 5, kind: input, shape index: {}]   ;;  %s1111_s6 = inlined_call_operand.vmem [shape: f32[1,256], index: 6, kind: input, shape index: {}]   ;;  %s1112_s7 = inlined_call_operand.hbm [shape: bf16[128,128], index: 7, kind: input, shape index: {}]   ;;  %s1113_s8 = inlined_call_operand.vmem [shape: f32[1,128], index: 8, kind: input, shape index: {}]   ;;  %s1114_s9 = inlined_call_operand.hbm [shape: bf16[16,256], index: 9, kind: output, shape index: {}]  }
   0x1   :  { %15 = vsyncpa [#allocation6], 0 }
   0x2   :  { %16 = vsyncpa [#allocation9], 0 }
   0x3   :  { %17 = vsyncpa [#allocation4], 0  ;;  %s964_s30 = smov [#allocation5]   ;;  %s965_s11 = smov [#allocation8]  }
   0x4   :  { %s35_s10 = sshll.u32 %s964_s30, 4  ;;  %s63_s12 = sshll.u32 %s965_s11, 4  ;;  %s36_s10 = int_to_ptr.vmem [resolvable:$true] %s35_s10  ;;  %s64_s12 = int_to_ptr.vmem [resolvable:$true] %s63_s12 }
   0x5   :  { %s844_s13 = scalar_lea.vmem %s36_s10, 1024  ;;  %p849_p1 = scmp.lt.s32.totalorder %s36_s10, %s36_s10 }
   0x6   :  { %p845_p0 = scmp.ne.s32.totalorder %s36_s10, %s844_s13  ;;  %p850_p2 = scmp.lt.s32.totalorder %s844_s13, %s844_s13 }
   0x8   :  { %p851_p3 = por %p850_p2, %p849_p1 }
   0xa   :  { %p852_p4 = pnand %p851_p3, %p845_p0 }
   0xc   :  { %855 = shalt.err (!%p852_p4)
}
   0xd   :  { %s966_s14 = smov 64   ;;  %s967_s15 = smov 4  }
   0xe   :  { %41 = dma.hbm_to_vmem [thread:$0]  %s1106_s1, 1024, %s36_s10, [#allocation6], %s966_s14, %s966_s14, %s967_s15  }
   0xf   :  { %s864_s18 = scalar_lea.vmem %s64_s12, 2048  ;;  %p869_p6 = scmp.lt.s32.totalorder %s64_s12, %s64_s12 }
  0x10   :  { %p865_p5 = scmp.ne.s32.totalorder %s64_s12, %s864_s18  ;;  %p870_p7 = scmp.lt.s32.totalorder %s864_s18, %s864_s18 }
  0x12   :  { %p871_p8 = por %p870_p7, %p869_p6 }
  0x14   :  { %p872_p9 = pnand %p871_p8, %p865_p5 }
  0x16   :  { %875 = shalt.err (!%p872_p9)
}
  0x17   :  { %s968_s19 = smov 128   ;;  %s969_s20 = smov 8  }
  0x18   :  { %69 = dma.hbm_to_vmem [thread:$0]  %s1110_s5, 2048, %s64_s12, [#allocation9], %s968_s19, %s968_s19, %s969_s20  }
  0x19   :  { %s970_s23 = smov [#allocation2]   ;;  %s971_s25 = smov [#allocation7]  }
  0x1a   :  { %s23_s24 = sshll.u32 %s970_s23, 4  ;;  %s49_s1 = sshll.u32 %s971_s25, 4  ;;  %s24_s24 = int_to_ptr.vmem [resolvable:$true] %s23_s24  ;;  %s50_s1 = int_to_ptr.vmem [resolvable:$true] %s49_s1 }
  0x1b   :  { %s884_s26 = scalar_lea.vmem %s24_s24, 128  ;;  %p889_p11 = scmp.lt.s32.totalorder %s24_s24, %s24_s24 }
  0x1c   :  { %p885_p10 = scmp.ne.s32.totalorder %s24_s24, %s884_s26  ;;  %p890_p12 = scmp.lt.s32.totalorder %s884_s26, %s884_s26 }
  0x1e   :  { %p891_p13 = por %p890_p12, %p889_p11 }
  0x20   :  { %p892_p0 = pnand %p891_p13, %p885_p10 }
  0x22   :  { %895 = shalt.err (!%p892_p0)
}
  0x23   :  { %29 = dma.hbm_to_vmem [thread:$0]  %s1105_s0, 128, %s24_s24, [#allocation3], %s966_s14, %s966_s14, %s967_s15  }
  0x24   :  { %s904_s5 = scalar_lea.vmem %s50_s1, 1024  ;;  %p909_p2 = scmp.lt.s32.totalorder %s50_s1, %s50_s1 }
  0x25   :  { %p905_p1 = scmp.ne.s32.totalorder %s50_s1, %s904_s5  ;;  %p910_p3 = scmp.lt.s32.totalorder %s904_s5, %s904_s5 }
  0x27   :  { %p911_p4 = por %p910_p3, %p909_p2 }
  0x29   :  { %p912_p5 = pnand %p911_p4, %p905_p1 }
  0x2b   :  { %915 = shalt.err (!%p912_p5)
}
  0x2c   :  { %55 = dma.hbm_to_vmem [thread:$0]  %s1108_s3, 1024, %s50_s1, [#allocation6], %s966_s14, %s966_s14, %s967_s15  }
  0x2d   :  { %s972_s10 = smov [#allocation10]  }
  0x2e   :  { %s77_s11 = sshll.u32 %s972_s10, 4  ;;  %s78_s11 = int_to_ptr.vmem [resolvable:$true] %s77_s11 }
  0x2f   :  { %s924_s12 = scalar_lea.vmem %s78_s11, 1024  ;;  %p929_p7 = scmp.lt.s32.totalorder %s78_s11, %s78_s11 }
  0x30   :  { %p925_p6 = scmp.ne.s32.totalorder %s78_s11, %s924_s12  ;;  %p930_p8 = scmp.lt.s32.totalorder %s924_s12, %s924_s12 }
  0x32   :  { %p931_p9 = por %p930_p8, %p929_p7 }
  0x34   :  { %p932_p10 = pnand %p931_p9, %p925_p6 }
  0x36   :  { %935 = shalt.err (!%p932_p10)
}
  0x37   :  { %83 = dma.hbm_to_vmem [thread:$0]  %s1112_s7, 1024, %s78_s11, [#allocation9], %s966_s14, %s966_s14, %s967_s15  }
  0x38   :  { %956 = dma.done.wait [#allocation3], 128  }
  0x39   :  { %957 = vsyncadd [#allocation3], 4294967168 }
  0x3a   :  { %958 = dma.done.wait [#allocation6], 2048  }
  0x3b   :  { %959 = vsyncadd [#allocation6], 4294965248 }
  0x3c   :  { %960 = dma.done.wait [#allocation9], 3072  }
  0x3d   :  { %961 = vsyncadd [#allocation9], 4294964224  ;;  %v973_v0 = vmov 0.0   ;;  %vm974_vm0 = vmmov 0   ;;  %v787_v1 = vld [vmem:[#allocation5 + $0x38] sm:$0xff]   ;;  %v788_v2 = vld [vmem:[#allocation5 + $0x30] sm:$0xff]   ;;  %v358_v63 = vlaneseq }
  0x3e   :  { %714 = vmatprep.subr.bf16.mxu0 %v973_v0  ;;  %730 = vmatprep.mubr.msk.bf16.mxu0 %vm974_vm0, %v973_v0  ;;  %v789_v3 = vld [vmem:[#allocation5 + $0x28] sm:$0xff]   ;;  %v796_v4 = vld [vmem:[#allocation7 + $0x38] sm:$0xff]   ;;  %v790_v5 = vld [vmem:[#allocation5 + $0x20] sm:$0xff]   ;;  %v975_v44 = vmov 0  }
  0x3f   :  { %734 = vmatprep.subr.bf16.mxu1 %v973_v0  ;;  %750 = vmatprep.mubr.msk.bf16.mxu1 %vm974_vm0, %v973_v0  ;;  %v797_v6 = vld [vmem:[#allocation7 + $0x30] sm:$0xff]   ;;  %v791_v7 = vld [vmem:[#allocation5 + $0x18] sm:$0xff]   ;;  %v798_v8 = vld [vmem:[#allocation7 + $0x28] sm:$0xff]  }
  0x40   :  { %715 = vmatpush3.bf16.msra.mxu0 %v787_v1  ;;  %735 = vmatpush3.bf16.msra.mxu1 %v796_v4  ;;  %v792_v9 = vld [vmem:[#allocation5 + $0x10] sm:$0xff]   ;;  %v799_v10 = vld [vmem:[#allocation7 + $0x20] sm:$0xff]   ;;  %v793_v11 = vld [vmem:[#allocation5 + $0x8] sm:$0xff]   ;;  %v359_v1 = vshrl.u32 %v358_v63, 7 }
  0x41   :  { %716 = vmatprep.subr.bf16.mxu0 %v973_v0  ;;  %736 = vmatprep.subr.bf16.mxu1 %v973_v0  ;;  %v800_v12 = vld [vmem:[#allocation7 + $0x18] sm:$0xff]   ;;  %v794_v13 = vld [vmem:[#allocation5] sm:$0xff]   ;;  %v801_v15 = vld [vmem:[#allocation7 + $0x10] sm:$0xff]  }
  0x42   :  { %v795_v14 = vld [vmem:[#allocation2] sm:$0xff]   ;;  %v802_v16 = vld [vmem:[#allocation7 + $0x8] sm:$0xff]   ;;  %v803_v17 = vld [vmem:[#allocation7] sm:$0xff]  }
  0x43   :  { %v804_v18 = vld [vmem:[#allocation8 + $0x70] ss:$8 sps:$4 sm:$0xff]   ;;  %v806_v19 = vld [vmem:[#allocation8 + $0x74] ss:$8 sps:$4 sm:$0xff]   ;;  %v809_v20 = vld [vmem:[#allocation8 + $0x64] ss:$8 sps:$4 sm:$0xff]  }
  0x44   :  { %717 = vmatpush3.bf16.msra.mxu0 %v788_v2  ;;  %737 = vmatpush3.bf16.msra.mxu1 %v797_v6  ;;  %v807_v21 = vld [vmem:[#allocation8 + $0x60] ss:$8 sps:$4 sm:$0xff]   ;;  %v812_v22 = vld [vmem:[#allocation8 + $0x54] ss:$8 sps:$4 sm:$0xff]   ;;  %v810_v23 = vld [vmem:[#allocation8 + $0x50] ss:$8 sps:$4 sm:$0xff]  }
  0x45   :  { %718 = vmatprep.subr.bf16.mxu0 %v973_v0  ;;  %738 = vmatprep.subr.bf16.mxu1 %v973_v0  ;;  %v815_v24 = vld [vmem:[#allocation8 + $0x44] ss:$8 sps:$4 sm:$0xff]   ;;  %v813_v25 = vld [vmem:[#allocation8 + $0x40] ss:$8 sps:$4 sm:$0xff]   ;;  %v818_v26 = vld [vmem:[#allocation8 + $0x34] ss:$8 sps:$4 sm:$0xff]  }
  0x46   :  { %v816_v27 = vld [vmem:[#allocation8 + $0x30] ss:$8 sps:$4 sm:$0xff]   ;;  %v821_v28 = vld [vmem:[#allocation8 + $0x24] ss:$8 sps:$4 sm:$0xff]   ;;  %v819_v29 = vld [vmem:[#allocation8 + $0x20] ss:$8 sps:$4 sm:$0xff]  }
  0x47   :  { %v639_v30 = vld [vmem:[%s1107_s2] ss:$0 sm:$0xff]  ;;  %v824_v40 = vld [vmem:[#allocation8 + $0x14] ss:$8 sps:$4 sm:$0xff]   ;;  %v827_v42 = vld [vmem:[#allocation8 + $0x4] ss:$8 sps:$4 sm:$0xff]  }
  0x48   :  { %719 = vmatpush3.bf16.msra.mxu0 %v789_v3  ;;  %739 = vmatpush3.bf16.msra.mxu1 %v798_v8  ;;  %v822_v41 = vld [vmem:[#allocation8 + $0x10] ss:$8 sps:$4 sm:$0xff]   ;;  %v825_v43 = vld [vmem:[#allocation8] ss:$8 sps:$4 sm:$0xff]   ;;  %v360_v2 = vsub.s32 0, %v359_v1 }
  0x49   :  { %720 = vmatprep.subr.bf16.mxu0 %v973_v0  ;;  %740 = vmatprep.subr.bf16.mxu1 %v973_v0  ;;  %v828_v45 = vld [vmem:[#allocation10 + $0x38] sm:$0xff]   ;;  %v829_v46 = vld [vmem:[#allocation10 + $0x30] sm:$0xff]   ;;  %v830_v47 = vld [vmem:[#allocation10 + $0x28] sm:$0xff]  }
  0x4a   :  { %v831_v48 = vld [vmem:[#allocation10 + $0x20] sm:$0xff]   ;;  %v832_v49 = vld [vmem:[#allocation10 + $0x18] sm:$0xff]   ;;  %v833_v60 = vld [vmem:[#allocation10 + $0x10] sm:$0xff]  }
  0x4b   :  { %v649_v50 = vld [vmem:[%s1109_s4] ss:$0 sm:$0xff]  ;;  %v834_v61 = vld [vmem:[#allocation10 + $0x8] sm:$0xff]   ;;  %v835_v62 = vld [vmem:[#allocation10] sm:$0xff]  }
  0x4c   :  { %721 = vmatpush3.bf16.msra.mxu0 %v790_v5  ;;  %741 = vmatpush3.bf16.msra.mxu1 %v799_v10  ;;  %v356_v3 = vld [vmem:[%s1111_s6] sm:$0x3]  ;;  %s976_s6 = smov [#allocation11]  }
  0x4d   :  { %722 = vmatprep.subr.bf16.mxu0 %v973_v0  ;;  %742 = vmatprep.subr.bf16.mxu1 %v973_v0  ;;  %v361_v4 = vrot.slane %v356_v3, %v360_v2  ;;  %s625_s18 = sshll.u32 %s976_s6, 4  ;;  %s626_s18 = int_to_ptr.vmem [resolvable:$true] %s625_s18 }
  0x4e   :  { %s936_s21 = scalar_lea.vmem %s626_s18, 256  ;;  %p941_p12 = scmp.lt.s32.totalorder %s626_s18, %s626_s18 }
  0x4f   :  { %p937_p11 = scmp.ne.s32.totalorder %s626_s18, %s936_s21  ;;  %p942_p13 = scmp.lt.s32.totalorder %s936_s21, %s936_s21 }
  0x50   :  { %723 = vmatpush3.bf16.msra.mxu0 %v791_v7  ;;  %743 = vmatpush3.bf16.msra.mxu1 %v800_v12 }
  0x51   :  { %724 = vmatprep.subr.bf16.mxu0 %v973_v0  ;;  %744 = vmatprep.subr.bf16.mxu1 %v973_v0  ;;  %p943_p0 = por %p942_p13, %p941_p12 }
  0x53   :  { %p944_p1 = pnand %p943_p0, %p937_p11 }
  0x54   :  { %725 = vmatpush3.bf16.msra.mxu0 %v792_v9  ;;  %745 = vmatpush3.bf16.msra.mxu1 %v801_v15 }
  0x55   :  { %726 = vmatprep.subr.bf16.mxu0 %v973_v0  ;;  %746 = vmatprep.subr.bf16.mxu1 %v973_v0 }
  0x58   :  { %727 = vmatpush3.bf16.msra.mxu0 %v793_v11  ;;  %747 = vmatpush3.bf16.msra.mxu1 %v802_v16 }
  0x59   :  { %728 = vmatprep.subr.bf16.mxu0 %v973_v0  ;;  %748 = vmatprep.subr.bf16.mxu1 %v973_v0 }
  0x5c   :  { %729 = vmatpush3.bf16.msra.mxu0 %v794_v13  ;;  %749 = vmatpush3.bf16.msra.mxu1 %v803_v17 }
  0x5d   :  { %754 = vmatprep.subr.bf16.mxu1 %v973_v0  ;;  %448 = vmatprep.subr.bf16.mxu0 %v806_v19 }
  0x5f   :  { %731 = vmatmul.mubr.bf16.vlgmr.msra.gmra.mxu0 %v795_v14  ;;  %v674_v14 = vld [vmem:[%s1113_s8] ss:$0 sm:$0xff] }
  0x60   :  { %449 = vmatpush1.bf16.msra.mxu0 %v804_v18  ;;  %480 = vmatprep.mubr.bf16.mxu0 %v975_v44 }
  0x61   :  { %450 = vmatprep.subr.bf16.mxu0 %v809_v20 }
  0x64   :  { %451 = vmatpush1.bf16.msra.mxu0 %v807_v21 }
  0x65   :  { %452 = vmatprep.subr.bf16.mxu0 %v812_v22 }
  0x68   :  { %453 = vmatpush1.bf16.msra.mxu0 %v810_v23 }
  0x69   :  { %454 = vmatprep.subr.bf16.mxu0 %v815_v24 }
  0x6c   :  { %455 = vmatpush1.bf16.msra.mxu0 %v813_v25 }
  0x6d   :  { %456 = vmatprep.subr.bf16.mxu0 %v818_v26 }
  0x70   :  { %457 = vmatpush1.bf16.msra.mxu0 %v816_v27 }
  0x71   :  { %458 = vmatprep.subr.bf16.mxu0 %v821_v28 }
  0x74   :  { %459 = vmatpush1.bf16.msra.mxu0 %v819_v29 }
  0x75   :  { %460 = vmatprep.subr.bf16.mxu0 %v824_v40 }
  0x78   :  { %461 = vmatpush1.bf16.msra.mxu0 %v822_v41 }
  0x79   :  { %462 = vmatprep.subr.bf16.mxu0 %v827_v42 }
  0x7c   :  { %463 = vmatpush1.bf16.msra.mxu0 %v825_v43 }
 0x11f   :  { %v215_v31 = vpop.f32.mrf.mxu0 }
 0x120   :  { %v216_v33 = vadd.f32 %v639_v30, %v215_v31 }
 0x121   :  { %v732_v32 = vpop.f32.mrf.mxu0 }
 0x122   :  { %v222_v37 = vmax.f32 %v216_v33, 0.0 }
 0x123   :  { %v218_v34 = vpop.f32.mrf.mxu0 }
 0x124   :  { %v219_v35 = vadd.f32 %v639_v30, %v218_v34 }
 0x125   :  { %v733_v36 = vpop.f32.mrf.mxu0 }
 0x126   :  { %v223_v38 = vmax.f32 %v219_v35, 0.0 }
 0x128   :  { %v224_v39 = vpack.c.bf16 %v223_v38, %v222_v37 }
 0x12a   :  { %751 = vmatmul.mubr.bf16.vlgmr.msra.gmra.mxu1 %v224_v39 }
 0x12b   :  { %770 = vmatprep.mubr.msk.bf16.mxu1 %vm974_vm0, %v973_v0  ;;  %755 = vmatpush3.bf16.msra.mxu1 %v828_v45 }
 0x12c   :  { %756 = vmatprep.subr.bf16.mxu1 %v973_v0 }
 0x12f   :  { %757 = vmatpush3.bf16.msra.mxu1 %v829_v46 }
 0x130   :  { %758 = vmatprep.subr.bf16.mxu1 %v973_v0 }
 0x133   :  { %759 = vmatpush3.bf16.msra.mxu1 %v830_v47 }
 0x134   :  { %760 = vmatprep.subr.bf16.mxu1 %v973_v0 }
 0x137   :  { %761 = vmatpush3.bf16.msra.mxu1 %v831_v48 }
 0x138   :  { %762 = vmatprep.subr.bf16.mxu1 %v973_v0 }
 0x13b   :  { %763 = vmatpush3.bf16.msra.mxu1 %v832_v49 }
 0x13c   :  { %764 = vmatprep.subr.bf16.mxu1 %v973_v0 }
 0x13f   :  { %765 = vmatpush3.bf16.msra.mxu1 %v833_v60 }
 0x140   :  { %766 = vmatprep.subr.bf16.mxu1 %v973_v0 }
 0x143   :  { %767 = vmatpush3.bf16.msra.mxu1 %v834_v61 }
 0x144   :  { %768 = vmatprep.subr.bf16.mxu1 %v973_v0  ;;  %v364_v0 = vsub.s32 1, %v359_v1 }
 0x146   :  { %v365_v13 = vrot.slane %v356_v3, %v364_v0 }
 0x147   :  { %769 = vmatpush3.bf16.msra.mxu1 %v835_v62 }
 0x1ea   :  { %v330_v51 = vpop.f32.mrf.mxu1 }
 0x1eb   :  { %v331_v53 = vadd.f32 %v649_v50, %v330_v51 }
 0x1ec   :  { %v752_v52 = vpop.f32.mrf.mxu1 }
 0x1ed   :  { %v337_v57 = vmax.f32 %v331_v53, 0.0 }
 0x1ee   :  { %v333_v54 = vpop.f32.mrf.mxu1 }
 0x1ef   :  { %v334_v55 = vadd.f32 %v649_v50, %v333_v54 }
 0x1f0   :  { %v753_v56 = vpop.f32.mrf.mxu1 }
 0x1f1   :  { %v338_v58 = vmax.f32 %v334_v55, 0.0 }
 0x1f3   :  { %v339_v59 = vpack.c.bf16 %v338_v58, %v337_v57 }
 0x1f5   :  { %481 = vmatmul.mubr.bf16.vlgmr.msra.gmra.mxu0 %v339_v59 }
 0x2b5   :  { %v482_v5 = vpop.f32.mrf.mxu0 }
 0x2b6   :  { %v483_v7 = vadd.f32 %v482_v5, %v361_v4 }
 0x2b7   :  { %v484_v6 = vpop.f32.mrf.mxu0 }
 0x2b8   :  { %v491_v10 = vmax.f32 %v483_v7, 0.0  ;;  %v485_v16 = vadd.f32 %v484_v6, %v365_v13 }
 0x2b9   :  { %v486_v8 = vpop.f32.mrf.mxu0 }
 0x2ba   :  { %v487_v9 = vadd.f32 %v486_v8, %v361_v4 }
 0x2bb   :  { %v488_v18 = vpop.f32.mrf.mxu0 }
 0x2bc   :  { %v492_v11 = vmax.f32 %v487_v9, 0.0  ;;  %v489_v22 = vadd.f32 %v488_v18, %v365_v13 }
 0x2be   :  { %v493_v12 = vpack.c.bf16 %v492_v11, %v491_v10 }
 0x2c0   :  { %771 = vmatmul.mubr.bf16.vlgmr.msra.gmra.mxu1 %v493_v12 }
 0x380   :  { %v599_v15 = vpop.f32.mrf.mxu1 }
 0x381   :  { %v600_v17 = vadd.f32 %v674_v14, %v599_v15 }
 0x382   :  { %v772_v19 = vpop.f32.mrf.mxu1 }
 0x383   :  { %v685_v20 = vpack.c.bf16 %v485_v16, %v600_v17 }
 0x384   :  { %v602_v21 = vpop.f32.mrf.mxu1 }
 0x385   :  { %618 = vst [vmem:[#allocation11] sm:$0xff] %v685_v20  ;;  %v603_v23 = vadd.f32 %v674_v14, %v602_v21 }
 0x386   :  { %v773_v24 = vpop.f32.mrf.mxu1 }
 0x387   :  { %v686_v25 = vpack.c.bf16 %v489_v22, %v603_v23 }
 0x389   :  { %619 = vst [vmem:[#allocation11 + $0x8] sm:$0xff] %v686_v25 }
 0x38a   :  { %947 = shalt.err (!%p944_p1)
}
 0x38b   :  { %631 = dma.vmem_to_hbm [thread:$0]  %s626_s18, 256, %s1114_s9, [#allocation4], %s968_s19, %s968_s19, %s969_s20  }
 0x38c   :  { %962 = dma.done.wait [#allocation4], 256  }
 0x38d   :  { %963 = vsyncadd [#allocation4], 4294967040 }
 0x38e   :  { %635 = vsyncpa [#allocation3], 1 }
 0x38f   :  { %636 = vsyncpa [#allocation6], 1 }
 0x390   :  { %637 = vsyncpa [#allocation9], 1 }
 0x391   :  { %638 = vsyncpa [#allocation4], 1 }

</bundles_post_ra>
